<compile_context>
chip_gen: v5e
topology: v5e:2x2
jax: 0.10.0
libtpu: 0.0.40
codegen_flags: <defaults>
</compile_context>

<pallas_src>
import math
import functools

import jax
import jax.numpy as jnp
from jax import lax
from jax.experimental import pallas as pl
from jax.experimental.pallas import tpu as pltpu


_MASK_VALUE = -1e30                       # finite "minus infinity", bf16-representable

_LANE_TILES = (2048, 1024, 512, 384, 256, 128)                       # multiples of 128
_SUBLANE_TILES = (2048, 1024, 512, 384, 256, 128, 64, 32, 16, 8)     # multiples of 8


def _vmem_capacity_bytes():
    try:
        info = pltpu.get_tpu_info()
        cap = getattr(info, "vmem_capacity_bytes", None)
        if cap:
            return int(cap)
    except Exception:
        pass
    return 64 * 1024 * 1024               # conservative default (v7x)


_VMEM_CAP = _vmem_capacity_bytes()
_VMEM_LIMIT = min(int(0.65 * _VMEM_CAP), 100 * 1024 * 1024)


def _default_linear_blocks():
    # 128-MiB VMEM parts (v5e/v6e) can afford bigger N/K tiles; v7x (64 MiB) keeps 512.
    if _VMEM_CAP >= 96 * 1024 * 1024:
        return 512, 1024, 1024
    return 512, 512, 512


def _pick_tile(dim, target, candidates):
    """Largest candidate <= target that evenly divides dim; full dim otherwise."""
    if dim <= target:
        return dim
    for c in candidates:
        if c <= target and dim % c == 0:
            return c
    return dim


# ----------------------------------------------------------------------------
# Tiled linear:  y = x @ W + b   (W stored as [Din, Dout], compute dtype).
# ----------------------------------------------------------------------------
def _linear_acc_kernel(x_ref, w_ref, b_ref, o_ref, acc_ref):
    k = pl.program_id(2)

    @pl.when(k == 0)
    def _init():
        acc_ref[...] = jnp.zeros(acc_ref.shape, jnp.float32)

    acc_ref[...] += jnp.dot(x_ref[...], w_ref[...],
                            preferred_element_type=jnp.float32)

    @pl.when(k == pl.num_programs(2) - 1)
    def _finalize():
        o_ref[...] = (acc_ref[...] + b_ref[...].astype(jnp.float32)).astype(o_ref.dtype)


def _linear_bias_kernel(x_ref, w_ref, b_ref, o_ref):
    # Single-K-tile fast path: no scratch accumulator round-trip.
    o_ref[...] = (jnp.dot(x_ref[...], w_ref[...], preferred_element_type=jnp.float32)
                  + b_ref[...].astype(jnp.float32)).astype(o_ref.dtype)


def linear(x2d, w, b, *, out_dtype=None, block_m=None, block_n=None, block_k=None):
    """x2d: [M, K], w: [K, N] (pre-transposed), b: [N] -> [M, N] in out_dtype."""
    M, K = x2d.shape
    Kw, N = w.shape
    assert K == Kw, (K, Kw)
    out_dtype = out_dtype or x2d.dtype

    dbm, dbn, dbk = _default_linear_blocks()
    block_m = block_m or dbm
    block_n = block_n or dbn
    block_k = block_k or dbk

    tm = _pick_tile(M, block_m, _SUBLANE_TILES)
    tn = _pick_tile(N, block_n, _LANE_TILES)
    tk = _pick_tile(K, block_k, _LANE_TILES)
    nk = K // tk

    b2d = b.reshape(1, N).astype(jnp.float32)

    cost = pl.CostEstimate(
        flops=2 * M * N * K,
        transcendentals=0,
        bytes_accessed=int(M * K * x2d.dtype.itemsize + K * N * w.dtype.itemsize
                           + 4 * N + M * N * jnp.dtype(out_dtype).itemsize),
    )

    if nk == 1:
        return pl.pallas_call(
            _linear_bias_kernel,
            out_shape=jax.ShapeDtypeStruct((M, N), out_dtype),
            grid=(M // tm, N // tn),
            in_specs=[
                pl.BlockSpec((tm, K), lambda i, j: (i, 0)),
                pl.BlockSpec((K, tn), lambda i, j: (0, j)),
                pl.BlockSpec((1, tn), lambda i, j: (0, j)),
            ],
            out_specs=pl.BlockSpec((tm, tn), lambda i, j: (i, j)),
            compiler_params=pltpu.CompilerParams(
                dimension_semantics=("parallel", "parallel"),
                vmem_limit_bytes=_VMEM_LIMIT),
            cost_estimate=cost,
        )(x2d, w, b2d)

    return pl.pallas_call(
        _linear_acc_kernel,
        out_shape=jax.ShapeDtypeStruct((M, N), out_dtype),
        grid=(M // tm, N // tn, nk),
        in_specs=[
            pl.BlockSpec((tm, tk), lambda i, j, kk: (i, kk)),
            pl.BlockSpec((tk, tn), lambda i, j, kk: (kk, j)),
            pl.BlockSpec((1, tn), lambda i, j, kk: (0, j)),
        ],
        out_specs=pl.BlockSpec((tm, tn), lambda i, j, kk: (i, j)),
        scratch_shapes=[pltpu.VMEM((tm, tn), jnp.float32)],
        compiler_params=pltpu.CompilerParams(
            dimension_semantics=("parallel", "parallel", "arbitrary"),
            vmem_limit_bytes=_VMEM_LIMIT),
        cost_estimate=cost,
    )(x2d, w, b2d)


# ----------------------------------------------------------------------------
# Flash attention kernel.  Blocks keep all heads packed along the minor dim:
#   q_ref: (1, bq, D), k_ref/v_ref: (1, bkv, D), o_ref: (1, bq, D)
# Head-batched online-softmax state (f32) lives in VMEM scratch:
#   m_sc/l_sc: (H, bq, 1),  acc_sc: (H, bq, dk)
# The 1/sqrt(dk) scale is pre-baked into the Q projection weights.
# ----------------------------------------------------------------------------
def _flash_attention_kernel(*refs, causal, has_bias, n_heads, dk, blk_q, blk_k):
    if has_bias:
        q_ref, k_ref, v_ref, bias_ref, o_ref, m_sc, l_sc, acc_sc = refs
    else:
        q_ref, k_ref, v_ref, o_ref, m_sc, l_sc, acc_sc = refs
        bias_ref = None

    qi = pl.program_id(1)
    ki = pl.program_id(2)

    @pl.when(ki == 0)
    def _init():
        m_sc[...] = jnp.full(m_sc.shape, -jnp.inf, jnp.float32)
        l_sc[...] = jnp.zeros(l_sc.shape, jnp.float32)
        acc_sc[...] = jnp.zeros(acc_sc.shape, jnp.float32)

    def _compute():
        q = q_ref[0].reshape(blk_q, n_heads, dk)
        kk = k_ref[0].reshape(blk_k, n_heads, dk)
        v = v_ref[0].reshape(blk_k, n_heads, dk)

        # Head-batched QK^T: one batched matmul instead of an H-way unroll.
        s = jnp.einsum("qhd,khd->hqk", q, kk,
                       preferred_element_type=jnp.float32)          # (H, bq, bk)
        if has_bias:
            s = s + bias_ref[0].astype(jnp.float32)[None]
        if causal:
            rows = qi * blk_q + lax.broadcasted_iota(jnp.int32, (blk_q, blk_k), 0)
            cols = ki * blk_k + lax.broadcasted_iota(jnp.int32, (blk_q, blk_k), 1)
            s = jnp.where((cols <= rows)[None], s, _MASK_VALUE)

        m_prev = m_sc[...]                                           # (H, bq, 1)
        m_new = jnp.maximum(m_prev, jnp.max(s, axis=-1, keepdims=True))
        alpha = jnp.exp(m_prev - m_new)
        p = jnp.exp(s - m_new)                                       # (H, bq, bk) f32
        l_sc[...] = alpha * l_sc[...] + jnp.sum(p, axis=-1, keepdims=True)
        acc_sc[...] = alpha * acc_sc[...] + jnp.einsum(
            "hqk,khd->hqd", p.astype(v.dtype), v,
            preferred_element_type=jnp.float32)                     # (H, bq, dk)
        m_sc[...] = m_new

    if causal:
        # Skip kv tiles strictly above the diagonal of this q tile.
        @pl.when(ki * blk_k <= qi * blk_q + (blk_q - 1))
        def _():
            _compute()
    else:
        _compute()

    @pl.when(ki == pl.num_programs(2) - 1)
    def _finalize():
        use_approx = o_ref.dtype != jnp.float32     # EUP approx recip for bf16 outputs
        inv_l = pl.reciprocal(l_sc[...], approx=use_approx)          # (H, bq, 1)
        out = acc_sc[...] * inv_l                                    # (H, bq, dk)
        # Re-pack heads along the lane dim and do a single lane-dense store.
        packed = jnp.concatenate([out[h] for h in range(n_heads)], axis=-1)
        o_ref[0] = packed.astype(o_ref.dtype)


def flash_attention(q_or_qkv, k, v, *, n_heads, bias=None, causal=False,
                    block_q=256, block_kv=256, fused_qkv=False, out_dtype=None):
    """Multi-head scaled dot-product attention (scale pre-baked into Q).

    q_or_qkv: [B, Sq, D]   (or fused [B, Sq, 3*D] when fused_qkv=True)
    k, v:     [B, Sk, D]   (ignored when fused_qkv=True)
    bias:     optional additive bias [B or 1, Sq, Sk] in the compute dtype
    returns:  [B, Sq, D], heads packed along the last dim.
    """
    if fused_qkv:
        B, Sq, D3 = q_or_qkv.shape
        D = D3 // 3
        Sk = Sq
    else:
        B, Sq, D = q_or_qkv.shape
        Sk = k.shape[1]
    dk = D // n_heads
    in_dtype = q_or_qkv.dtype
    out_dtype = out_dtype or in_dtype

    bq = _pick_tile(Sq, block_q, _LANE_TILES)
    bkv = _pick_tile(Sk, block_kv, _LANE_TILES)
    grid = (B, Sq // bq, Sk // bkv)

    def _clamp_kv(q_idx, k_idx):
        # Causal: clamp to the last block on/under the diagonal so skipped
        # upper-triangular grid points repeat a block index and the DMA is elided.
        if causal:
            return jnp.minimum(k_idx, (q_idx * bq + bq - 1) // bkv)
        return k_idx

    q_col, k_col, v_col = (0, 1, 2) if fused_qkv else (0, 0, 0)

    def q_map(b, q_idx, k_idx):
        return (b, q_idx, q_col)

    def k_map(b, q_idx, k_idx):
        return (b, _clamp_kv(q_idx, k_idx), k_col)

    def v_map(b, q_idx, k_idx):
        return (b, _clamp_kv(q_idx, k_idx), v_col)

    in_specs = [
        pl.BlockSpec((1, bq, D), q_map),
        pl.BlockSpec((1, bkv, D), k_map),
        pl.BlockSpec((1, bkv, D), v_map),
    ]
    operands = [q_or_qkv, q_or_qkv, q_or_qkv] if fused_qkv else [q_or_qkv, k, v]

    if bias is not None:
        bias_batch = bias.shape[0]

        def bias_map(b, q_idx, k_idx):
            return (b if bias_batch > 1 else 0, q_idx, _clamp_kv(q_idx, k_idx))

        in_specs.append(pl.BlockSpec((1, bq, bkv), bias_map))
        operands.append(bias)

    kern = functools.partial(
        _flash_attention_kernel, causal=causal, has_bias=bias is not None,
        n_heads=n_heads, dk=dk, blk_q=bq, blk_k=bkv)

    causal_frac = 0.5 if causal else 1.0
    itemsize = jnp.dtype(in_dtype).itemsize
    bytes_accessed = int((B * Sq * D + 2 * B * Sk * D) * itemsize
                         + B * Sq * D * jnp.dtype(out_dtype).itemsize)
    if bias is not None:
        bytes_accessed += int(bias.size * jnp.dtype(bias.dtype).itemsize)
    cost = pl.CostEstimate(
        flops=int(4 * B * Sq * Sk * D * causal_frac),
        transcendentals=int(B * n_heads * Sq * Sk * causal_frac),
        bytes_accessed=bytes_accessed,
    )

    return pl.pallas_call(
        kern,
        out_shape=jax.ShapeDtypeStruct((B, Sq, D), out_dtype),
        grid=grid,
        in_specs=in_specs,
        out_specs=pl.BlockSpec((1, bq, D), lambda b, q_idx, k_idx: (b, q_idx, 0)),
        scratch_shapes=[
            pltpu.VMEM((n_heads, bq, 1), jnp.float32),    # running max m
            pltpu.VMEM((n_heads, bq, 1), jnp.float32),    # running denom l
            pltpu.VMEM((n_heads, bq, dk), jnp.float32),   # un-normalized acc
        ],
        compiler_params=pltpu.CompilerParams(
            dimension_semantics=("parallel", "parallel", "arbitrary"),
            vmem_limit_bytes=_VMEM_LIMIT),
        cost_estimate=cost,
    )(*operands)


# ----------------------------------------------------------------------------
# Full StandardMultiHeadAttention forward (eval mode => dropout = 0).
# ----------------------------------------------------------------------------
def _mask_to_bias(mask, dtype):
    """Boolean keep-mask or additive float mask -> additive bias (no B broadcast)."""
    m = jnp.asarray(mask)
    if m.ndim == 2:
        m = m[None]                                   # (1, Sq, Sk)
    if m.dtype == jnp.bool_:
        bias = jnp.where(m, 0.0, _MASK_VALUE)
    else:                                             # torch-style additive float mask
        bias = jnp.maximum(m.astype(jnp.float32), _MASK_VALUE)
    return bias.astype(dtype)


def multi_head_attention(query, key, value, kparams, n_heads, mask=None,
                         is_causal=False, q_block=256, kv_block=256):
    """query/key/value: [B, S, D] f32.  kparams: output of prepare_params()."""
    B, Sq, D = query.shape
    Sk = key.shape[1]
    assert value.shape[1] == Sk
    assert D % n_heads == 0
    cd = kparams["w_o"].dtype                         # compute dtype (bf16 or f32)
    out_dtype = query.dtype

    bias = None if mask is None else _mask_to_bias(mask, cd)

    fused = (query is key) and (key is value) and (D % 128 == 0) and ("w_qkv" in kparams)
    if fused:
        # Self-attention fast path: one fused QKV projection, consumed in place.
        qkv = linear(query.reshape(B * Sq, D).astype(cd),
                     kparams["w_qkv"], kparams["b_qkv"], out_dtype=cd)
        qkv = qkv.reshape(B, Sq, 3 * D)
        attn = flash_attention(qkv, None, None, n_heads=n_heads, bias=bias,
                               causal=is_causal, block_q=q_block, block_kv=kv_block,
                               fused_qkv=True, out_dtype=cd)
    else:
        Q = linear(query.reshape(B * Sq, D).astype(cd), kparams["w_q"], kparams["b_q"],
                   out_dtype=cd).reshape(B, Sq, D)
        K = linear(key.reshape(B * Sk, D).astype(cd), kparams["w_k"], kparams["b_k"],
                   out_dtype=cd).reshape(B, Sk, D)
        V = linear(value.reshape(B * Sk, D).astype(cd), kparams["w_v"], kparams["b_v"],
                   out_dtype=cd).reshape(B, Sk, D)
        attn = flash_attention(Q, K, V, n_heads=n_heads, bias=bias, causal=is_causal,
                               block_q=q_block, block_kv=kv_block, out_dtype=cd)

    # Heads already packed along the last dim -> free reshape, no transpose.
    out = linear(attn.reshape(B * Sq, D), kparams["w_o"], kparams["b_o"],
                 out_dtype=out_dtype).reshape(B, Sq, D)
    return out


# ----------------------------------------------------------------------------
# Parameter init (canonical f32, matches the PyTorch module) + kernel prep
# (compute dtype cast, scale baked into Q, fused QKV weight).
# ----------------------------------------------------------------------------
def init_params(key, d_model):
    def xavier(k, fan_in, fan_out):
        limit = math.sqrt(6.0 / (fan_in + fan_out))
        return jax.random.uniform(k, (fan_in, fan_out), jnp.float32, -limit, limit)

    ks = jax.random.split(key, 4)
    z = jnp.zeros((d_model,), jnp.float32)
    return {
        "w_q": xavier(ks[0], d_model, d_model), "b_q": z,
        "w_k": xavier(ks[1], d_model, d_model), "b_k": z,
        "w_v": xavier(ks[2], d_model, d_model), "b_v": z,
        "w_o": xavier(ks[3], d_model, d_model), "b_o": z,
    }


def prepare_params(params, n_heads, compute_dtype=jnp.bfloat16):
    """Cast weights to the MXU compute dtype and bake 1/sqrt(d_k) into Q."""
    d_model = params["w_q"].shape[0]
    dk = d_model // n_heads
    scale = 1.0 / math.sqrt(dk)
    cd = compute_dtype
    kp = {
        "w_q": (params["w_q"] * scale).astype(cd),
        "b_q": (params["b_q"] * scale).astype(jnp.float32),
        "w_k": params["w_k"].astype(cd), "b_k": params["b_k"].astype(jnp.float32),
        "w_v": params["w_v"].astype(cd), "b_v": params["b_v"].astype(jnp.float32),
        "w_o": params["w_o"].astype(cd), "b_o": params["b_o"].astype(jnp.float32),
    }
    kp["w_qkv"] = jnp.concatenate([kp["w_q"], kp["w_k"], kp["w_v"]], axis=1)
    kp["b_qkv"] = jnp.concatenate([kp["b_q"], kp["b_k"], kp["b_v"]], axis=0)
    return kp


# ----------------------------------------------------------------------------
# Pure-JAX f32 reference (forced to true f32 matmul precision).
# ----------------------------------------------------------------------------
def reference_mha(query, key, value, params, n_heads, mask=None, is_causal=False):
    B, Sq, D = query.shape
    Sk = key.shape[1]
    dk = D // n_heads
    scale = 1.0 / math.sqrt(dk)
    P = lax.Precision.HIGHEST

    def lin(x, w, b):
        return jnp.matmul(x, w, precision=P) + b

    Q = lin(query, params["w_q"], params["b_q"]).reshape(B, Sq, n_heads, dk).transpose(0, 2, 1, 3)
    K = lin(key, params["w_k"], params["b_k"]).reshape(B, Sk, n_heads, dk).transpose(0, 2, 1, 3)
    V = lin(value, params["w_v"], params["b_v"]).reshape(B, Sk, n_heads, dk).transpose(0, 2, 1, 3)
    s = jnp.einsum("bhqd,bhkd->bhqk", Q, K, precision=P) * scale
    if mask is not None:
        m = mask if mask.ndim == 3 else mask[None]
        if m.dtype == jnp.bool_:
            bias = jnp.where(m, 0.0, _MASK_VALUE)
        else:
            bias = jnp.maximum(m.astype(jnp.float32), _MASK_VALUE)
        s = s + bias[:, None, :, :]
    if is_causal:
        cm = jnp.tril(jnp.ones((Sq, Sk), bool))
        s = jnp.where(cm, s, _MASK_VALUE)
    p = jax.nn.softmax(s, axis=-1)
    o = jnp.einsum("bhqk,bhkd->bhqd", p, V, precision=P).transpose(0, 2, 1, 3).reshape(B, Sq, D)
    return lin(o, params["w_o"], params["b_o"])


def _check(name, out, ref, max_tol, mean_tol):
    err = jnp.abs(out.astype(jnp.float32) - ref.astype(jnp.float32))
    mx = float(jnp.max(err))
    mn = float(jnp.mean(err))
    assert mx < max_tol and mn < mean_tol, f"{name}: max_err={mx:.4g} mean_err={mn:.4g}"


if __name__ == "__main__":
    root = jax.random.PRNGKey(0)
    kp1, kq, kk, kv, km, kp2, kx = jax.random.split(root, 7)

    # ---- Case 1: cross-attention, f32 compute path, no mask ------------------
    B, S, D, H = 2, 8, 128, 4
    params = init_params(kp1, D)
    kparams_f32 = prepare_params(params, H, compute_dtype=jnp.float32)
    q_in = jax.random.normal(kq, (B, S, D), jnp.float32)
    k_in = jax.random.normal(kk, (B, S, D), jnp.float32)
    v_in = jax.random.normal(kv, (B, S, D), jnp.float32)

    out1 = jax.block_until_ready(multi_head_attention(q_in, k_in, v_in, kparams_f32, H))
    ref1 = reference_mha(q_in, k_in, v_in, params, H)
    assert out1.shape == (B, S, D)
    _check("case1 (f32)", out1, ref1, max_tol=3e-2, mean_tol=6e-3)

    # ---- Case 2: boolean padding mask, bf16 MXU path -------------------------
    kparams_bf16 = prepare_params(params, H, compute_dtype=jnp.bfloat16)
    mask = jax.random.bernoulli(km, 0.7, (B, S, S))
    mask = mask.at[:, :, 0].set(True)     # every query keeps at least one key
    out2 = jax.block_until_ready(
        multi_head_attention(q_in, k_in, v_in, kparams_bf16, H, mask=mask))
    ref2 = reference_mha(q_in, k_in, v_in, params, H, mask=mask)
    _check("case2 (bf16+mask)", out2, ref2, max_tol=2.5e-1, mean_tol=3e-2)

    # ---- Case 3: fused causal self-attention, bf16, multi-block flash path ---
    B2, S2, D2, H2 = 2, 256, 128, 4
    params2 = init_params(kp2, D2)
    kparams2 = prepare_params(params2, H2, compute_dtype=jnp.bfloat16)
    x = jax.random.normal(kx, (B2, S2, D2), jnp.float32)
    out3 = jax.block_until_ready(
        multi_head_attention(x, x, x, kparams2, H2, is_causal=True,
                             q_block=128, kv_block=128))
    ref3 = reference_mha(x, x, x, params2, H2, is_causal=True)
    assert out3.shape == (B2, S2, D2)
    _check("case3 (bf16+causal)", out3, ref3, max_tol=2.5e-1, mean_tol=3e-2)

    print("KERNEL_OK")
</pallas_src>

<mosaic_0001>
module attributes {stable_mosaic.version = 11 : i64} {
  func.func @_linear_bias_kernel(%arg0: i32, %arg1: i32, %arg2: memref<16x128xf32, #tpu.memory_space<vmem>>, %arg3: memref<128x128xf32, #tpu.memory_space<vmem>>, %arg4: memref<1x128xf32, #tpu.memory_space<vmem>>, %arg5: memref<16x128xf32, #tpu.memory_space<vmem>>) attributes {dimension_semantics = [#tpu.dimension_semantics<parallel>, #tpu.dimension_semantics<parallel>], iteration_bounds = array<i64: 1, 1>, scalar_prefetch = 0 : i64, scratch_operands = 0 : i64, tpu.core_type = #tpu.core_type<tc>, window_params = [{transform_indices = @transform_0, window_bounds = array<i64: 16, 128>}, {transform_indices = @transform_1, window_bounds = array<i64: 128, 128>}, {transform_indices = @transform_2, window_bounds = array<i64: 1, 128>}, {transform_indices = @transform_3, window_bounds = array<i64: 16, 128>}]} {
    %c0 = arith.constant 0 : index
    %c0_0 = arith.constant 0 : index
    %0 = vector.load %arg2[%c0, %c0_0] : memref<16x128xf32, #tpu.memory_space<vmem>>, vector<16x128xf32>
    %c0_1 = arith.constant 0 : index
    %c0_2 = arith.constant 0 : index
    %1 = vector.load %arg3[%c0_1, %c0_2] : memref<128x128xf32, #tpu.memory_space<vmem>>, vector<128x128xf32>
    %cst = arith.constant dense<0.000000e+00> : vector<16x128xf32>
    %2 = tpu.matmul %0, %1, %cst {dimension_numbers = #tpu.dot_dimension_numbers<[1], [0], [0], [1], [0, 0, 1, 1], [], []>} : vector<16x128xf32>, vector<128x128xf32>, vector<16x128xf32> -> vector<16x128xf32>
    %c0_3 = arith.constant 0 : index
    %c0_4 = arith.constant 0 : index
    %3 = vector.load %arg4[%c0_3, %c0_4] : memref<1x128xf32, #tpu.memory_space<vmem>>, vector<1x128xf32>
    %4 = vector.broadcast %3 : vector<1x128xf32> to vector<16x128xf32>
    %5 = arith.addf %2, %4 : vector<16x128xf32>
    %c0_5 = arith.constant 0 : index
    %c0_6 = arith.constant 0 : index
    %6 = vector.load %arg5[%c0_5, %c0_6] : memref<16x128xf32, #tpu.memory_space<vmem>>, vector<16x128xf32>
    tpu.vector_store %arg5[%c0_5, %c0_6], %5 {strides = array<i32>} : memref<16x128xf32, #tpu.memory_space<vmem>>, vector<16x128xf32>,
    return
  }
  func.func @transform_0(%arg0: i32, %arg1: i32) -> (i32, i32) {
    %c0_i32 = arith.constant 0 : i32
    %c0_i32_0 = arith.constant 0 : i32
    return %arg0, %c0_i32 : i32, i32
  }
  func.func @transform_1(%arg0: i32, %arg1: i32) -> (i32, i32) {
    %c0_i32 = arith.constant 0 : i32
    %c0_i32_0 = arith.constant 0 : i32
    return %c0_i32, %arg1 : i32, i32
  }
  func.func @transform_2(%arg0: i32, %arg1: i32) -> (i32, i32) {
    %c0_i32 = arith.constant 0 : i32
    %c0_i32_0 = arith.constant 0 : i32
    return %c0_i32, %arg1 : i32, i32
  }
  func.func @transform_3(%arg0: i32, %arg1: i32) -> (i32, i32) {
    %c0_i32 = arith.constant 0 : i32
    return %arg0, %arg1 : i32, i32
  }
}

</mosaic_0001>

<bundles_post_ra>
// kernel: tpu_custom_call.1
= control target key start
LH: loop header
LB: loop body
LE: loop exit
PB: predicated region body
PF: predicated region fallthrough
CT: control target
= control target key end

     0   :  { %8 = vsyncpa [#allocation3], 0  ;;  %s260_s0 = inlined_call_operand.hbm [shape: f32[16,128], index: 0, kind: input, shape index: {}]   ;;  %s261_s1 = inlined_call_operand.hbm [shape: f32[128,128], index: 1, kind: input, shape index: {}]   ;;  %s262_s2 = inlined_call_operand.vmem [shape: f32[1,128], index: 2, kind: input, shape index: {}]   ;;  %s263_s3 = inlined_call_operand.hbm [shape: f32[16,128], index: 3, kind: output, shape index: {}]  }
   0x1   :  { %9 = vsyncpa [#allocation6], 0 }
   0x2   :  { %10 = vsyncpa [#allocation4], 0  ;;  %s15_s14 = sshll.u32 %s260_s0, 4  ;;  %s214_s15 = smov [#allocation2]   ;;  %s16_s14 = int_to_ptr.hbm [resolvable:$true] %s15_s14 }
   0x3   :  { %s17_s16 = sshll.u32 %s214_s15, 4  ;;  %s28_s19 = sshll.u32 %s261_s1, 4  ;;  %s18_s16 = int_to_ptr.vmem [resolvable:$true] %s17_s16  ;;  %s29_s19 = int_to_ptr.hbm [resolvable:$true] %s28_s19 }
   0x4   :  { %s215_s20 = smov 128   ;;  %s216_s21 = smov 8  }
   0x5   :  { %23 = dma.hbm_to_vmem [thread:$0]  %s16_s14, 256, %s18_s16, [#allocation3], %s215_s20, %s215_s20, %s216_s21  }
   0x6   :  { %s217_s22 = smov [#allocation5]  }
   0x7   :  { %s30_s23 = sshll.u32 %s217_s22, 4  ;;  %s31_s23 = int_to_ptr.vmem [resolvable:$true] %s30_s23 }
   0x8   :  { %36 = dma.hbm_to_vmem [thread:$0]  %s29_s19, 2048, %s31_s23, [#allocation6], %s215_s20, %s215_s20, %s216_s21  }
   0x9   :  { %208 = dma.done.wait [#allocation3], 256  }
   0xa   :  { %209 = vsyncadd [#allocation3], 4294967040 }
   0xb   :  { %210 = dma.done.wait [#allocation6], 2048  }
   0xc   :  { %211 = vsyncadd [#allocation6], 4294965248  ;;  %v64_v0 = vld [vmem:[#allocation5 + $0x78] sm:$0xff]  ;;  %v63_v1 = vld [vmem:[#allocation5 + $0x70] sm:$0xff]  ;;  %s218_s24 = smov [#allocation7]   ;;  %s100_s28 = sshll.u32 %s263_s3, 4  ;;  %s101_s28 = int_to_ptr.hbm [resolvable:$true] %s100_s28 }
   0xd   :  { %69 = vmatpush.msra.mxu0 %v64_v0  ;;  %114 = vmatpush.msra.mxu1 %v64_v0  ;;  %v62_v2 = vld [vmem:[#allocation5 + $0x68] sm:$0xff]  ;;  %v61_v3 = vld [vmem:[#allocation5 + $0x60] sm:$0xff]  ;;  %v60_v4 = vld [vmem:[#allocation5 + $0x58] sm:$0xff]  ;;  %s98_s25 = sshll.u32 %s218_s24, 4  ;;  %s99_s25 = int_to_ptr.vmem [resolvable:$true] %s98_s25 }
   0xe   :  { %v59_v5 = vld [vmem:[#allocation5 + $0x50] sm:$0xff]  ;;  %v58_v6 = vld [vmem:[#allocation5 + $0x48] sm:$0xff]  ;;  %v57_v7 = vld [vmem:[#allocation5 + $0x40] sm:$0xff] }
   0xf   :  { %70 = vmatpush.msra.mxu0 %v63_v1  ;;  %115 = vmatpush.msra.mxu1 %v63_v1  ;;  %v56_v8 = vld [vmem:[#allocation5 + $0x38] sm:$0xff]  ;;  %v55_v9 = vld [vmem:[#allocation5 + $0x30] sm:$0xff]  ;;  %v54_v10 = vld [vmem:[#allocation5 + $0x28] sm:$0xff] }
  0x10   :  { %v53_v11 = vld [vmem:[#allocation5 + $0x20] sm:$0xff]  ;;  %v52_v12 = vld [vmem:[#allocation5 + $0x18] sm:$0xff]  ;;  %v51_v13 = vld [vmem:[#allocation5 + $0x10] sm:$0xff] }
  0x11   :  { %71 = vmatpush.msra.mxu0 %v62_v2  ;;  %116 = vmatpush.msra.mxu1 %v62_v2  ;;  %v50_v14 = vld [vmem:[#allocation5 + $0x8] sm:$0xff]  ;;  %v49_v15 = vld [vmem:[#allocation5] sm:$0xff]  ;;  %v47_v16 = vld [vmem:[#allocation2] sm:$0xff] }
  0x12   :  { %v48_v17 = vld [vmem:[#allocation2 + $0x8] sm:$0xff]  ;;  %v135_v18 = vld [vmem:[%s262_s2] ss:$0 sm:$0xff] }
  0x13   :  { %72 = vmatpush.msra.mxu0 %v61_v3  ;;  %117 = vmatpush.msra.mxu1 %v61_v3 }
  0x15   :  { %73 = vmatpush.msra.mxu0 %v60_v4  ;;  %118 = vmatpush.msra.mxu1 %v60_v4 }
  0x17   :  { %74 = vmatpush.msra.mxu0 %v59_v5  ;;  %119 = vmatpush.msra.mxu1 %v59_v5 }
  0x19   :  { %75 = vmatpush.msra.mxu0 %v58_v6  ;;  %120 = vmatpush.msra.mxu1 %v58_v6 }
  0x1b   :  { %76 = vmatpush.msra.mxu0 %v57_v7  ;;  %121 = vmatpush.msra.mxu1 %v57_v7 }
  0x1d   :  { %77 = vmatpush.msra.mxu0 %v56_v8  ;;  %122 = vmatpush.msra.mxu1 %v56_v8 }
  0x1f   :  { %78 = vmatpush.msra.mxu0 %v55_v9  ;;  %123 = vmatpush.msra.mxu1 %v55_v9 }
  0x21   :  { %79 = vmatpush.msra.mxu0 %v54_v10  ;;  %124 = vmatpush.msra.mxu1 %v54_v10 }
  0x23   :  { %80 = vmatpush.msra.mxu0 %v53_v11  ;;  %125 = vmatpush.msra.mxu1 %v53_v11 }
  0x25   :  { %81 = vmatpush.msra.mxu0 %v52_v12  ;;  %126 = vmatpush.msra.mxu1 %v52_v12 }
  0x27   :  { %82 = vmatpush.msra.mxu0 %v51_v13  ;;  %127 = vmatpush.msra.mxu1 %v51_v13 }
  0x29   :  { %83 = vmatpush.msra.mxu0 %v50_v14  ;;  %128 = vmatpush.msra.mxu1 %v50_v14 }
  0x2b   :  { %84 = vmatpush.msra.mxu0 %v49_v15  ;;  %129 = vmatpush.msra.mxu1 %v49_v15 }
  0x2c   :  { %85 = vmatmul.f32.vlgmr.msra.gmra.mxu0 %v47_v16  ;;  %88 = vmatmul.f32.vlgmr.msra.gmra.mxu1 %v48_v17 }
  0xa9   :  { %v86_v19 = vpop.f32.mrf.mxu0  ;;  %v89_v20 = vpop.f32.mrf.mxu1 }
  0xaa   :  { %v87_v21 = vadd.f32 %v135_v18, %v86_v19  ;;  %v90_v22 = vadd.f32 %v135_v18, %v89_v20 }
  0xac   :  { %92 = vst [vmem:[#allocation7] sm:$0xff] %v87_v21 }
  0xad   :  { %93 = vst [vmem:[#allocation7 + $0x8] sm:$0xff] %v90_v22 }
  0xae   :  { %106 = dma.vmem_to_hbm [thread:$0]  %s99_s25, 256, %s101_s28, [#allocation4], %s215_s20, %s215_s20, %s216_s21  }
  0xaf   :  { %212 = dma.done.wait [#allocation4], 256  }
  0xb0   :  { %213 = vsyncadd [#allocation4], 4294967040 }
  0xb1   :  { %111 = vsyncpa [#allocation3], 1 }
  0xb2   :  { %112 = vsyncpa [#allocation6], 1 }
  0xb3   :  { %113 = vsyncpa [#allocation4], 1 }

</bundles_post_ra>
